<compile_context>
chip_gen: v5e
topology: v5e:2x2
jax: 0.10.0
libtpu: 0.0.40
codegen_flags: <defaults>
</compile_context>

<pallas_src>
import jax
import jax.numpy as jnp
import numpy as np
from jax.experimental import pallas as pl
from jax.experimental.pallas import tpu as pltpu


# ----------------------------------------------------------------------------
# Host-side (traceable) banded-weight construction
# ----------------------------------------------------------------------------
def _deconv_banded_rhs(Wd, W):
    """Wd: (C_in, Ch, 2, 2) ConvTranspose2d weight -> (2, W*C_in, 2W*Ch) banded RHS.

    R[kh][w*C_in + ci, (2w+kw)*Ch + co] = Wd[ci, co, kh, kw]  (block diagonal in w).
    """
    C_in, Ch, KH, KW = Wd.shape
    blk = jnp.transpose(Wd, (2, 0, 3, 1)).reshape(KH, C_in, KW * Ch)   # [kh](ci, kw*Ch+co)
    eye = jnp.eye(W, dtype=Wd.dtype)
    R = jnp.einsum("ab,kcd->kacbd", eye, blk)
    return R.reshape(KH, W * C_in, W * KW * Ch)


def _conv_banded_rhs(Wc, part_channels, W2, pad):
    """Wc: (C_out, C_in_tot, K, K) Conv2d weight -> (K, D, W2*C_out) banded RHS.

    D = sum((W2+2*pad)*cp).  For part p at row base b_p:
      R[kh][b_p + j*cp + c, w*C_out + co] = Wc[co, off_p + c, kh, j - w]  (0<=j-w<K).
    """
    C_out, _, K, _ = Wc.shape
    Wj = W2 + 2 * pad
    j = jnp.arange(Wj)[:, None]
    w = jnp.arange(W2)[None, :]
    kw = j - w                                        # (Wj, W2)
    valid = (kw >= 0) & (kw < K)
    kw_c = jnp.clip(kw, 0, K - 1)
    parts, coff = [], 0
    for cp in part_channels:
        Wp = jnp.transpose(Wc[:, coff:coff + cp], (2, 1, 3, 0))        # (kh, c, kw, co)
        Rp = Wp[:, :, kw_c, :]                                         # (kh, c, Wj, W2, co)
        Rp = jnp.where(valid[None, None, :, :, None], Rp, 0.0)
        Rp = jnp.transpose(Rp, (0, 2, 1, 3, 4)).reshape(K, Wj * cp, W2 * C_out)
        parts.append(Rp)
        coff += cp
    return jnp.concatenate(parts, axis=1)


# ----------------------------------------------------------------------------
# Kernel 1: ConvTranspose2d(k=2, s=2) + bias + PReLU, pixel-shuffle fused into
# the store.  LHS is the lane-dense (th, W*C_in) row tile; the banded RHS maps
# input lanes straight to the channel-flattened output lanes (2w+kw)*Ch + co.
# ----------------------------------------------------------------------------
def _make_deconv_kernel(th, W, Ch):
    def kernel(x_ref, r_ref, b_ref, a_ref, o_ref):
        x = x_ref[0]                                   # (th, W*C_in)
        b = b_ref[...]                                 # (1, 2W*Ch) f32 (hoisted)
        a = a_ref[...]
        rows = []
        for kh in range(2):
            y = jnp.dot(x, r_ref[kh], preferred_element_type=jnp.float32)  # (th, 2W*Ch)
            y = y + b
            y = jnp.where(y >= 0.0, y, a * y)          # PReLU
            rows.append(y)
        # interleave the two kh planes: tile-local output row = 2*i + kh
        out = jnp.stack(rows, axis=1).reshape(2 * th, 2 * W * Ch)
        o_ref[0] = out.astype(o_ref.dtype)
    return kernel


def deconv_prelu(x_flat, r_dec, b_row, a_row, *, Ch, tile_h, out_dtype,
                 interpret=False):
    N, H, WC_in = x_flat.shape
    W = r_dec.shape[2] // (2 * Ch)
    th = tile_h
    assert H % th == 0 and (th == H or th % 8 == 0)
    cparams = None if interpret else pltpu.CompilerParams(
        dimension_semantics=("parallel", "parallel"),
        vmem_limit_bytes=48 * 1024 * 1024)
    return pl.pallas_call(
        _make_deconv_kernel(th, W, Ch),
        out_shape=jax.ShapeDtypeStruct((N, 2 * H, 2 * W * Ch), out_dtype),
        grid=(N, H // th),
        in_specs=[
            pl.BlockSpec((1, th, WC_in), lambda n, r: (n, r, 0)),
            pl.BlockSpec(r_dec.shape, lambda n, r: (0, 0, 0)),
            pl.BlockSpec((1, 2 * W * Ch), lambda n, r: (0, 0)),
            pl.BlockSpec((1, 2 * W * Ch), lambda n, r: (0, 0)),
        ],
        out_specs=pl.BlockSpec((1, 2 * th, 2 * W * Ch), lambda n, r: (n, r, 0)),
        compiler_params=cparams,
        interpret=interpret,
    )(x_flat, r_dec, b_row, a_row)


# ----------------------------------------------------------------------------
# Kernel 2: 5x5 conv (stride 1, 'same') + bias + ReLU, with
#   * fused channel concat (parts laid out side by side along the scratch lanes,
#     matched by the banded RHS row order),
#   * fused residual add + final ReLU in the last conv,
#   * halo zero-padded once per step into a persistent VMEM scratch,
#   * K full-width matmuls whose LHS is a sublane-offset slice of the scratch.
# ----------------------------------------------------------------------------
def _make_conv_kernel(H2, W2, part_channels, C_out, K, n_res, res_from_inputs):
    n_parts = len(part_channels)
    pad = (K - 1) // 2
    Wj = W2 + 2 * pad
    Ch = C_out // 2

    def kernel(*refs):
        i = 0
        x_refs = refs[i:i + n_parts]; i += n_parts
        rhs_ref = refs[i]; i += 1
        b_ref = refs[i]; i += 1
        res_refs = refs[i:i + n_res]; i += n_res
        o_ref = refs[i]; i += 1
        xpad_ref = refs[i]

        dt = xpad_ref.dtype
        D = xpad_ref.shape[1]

        # ---- fill the padded scratch: zero halo rows/lanes, store part bodies ----
        zrow = jnp.zeros((pad, D), dt)
        xpad_ref[0:pad, :] = zrow
        xpad_ref[pad + H2:pad + H2 + pad, :] = zrow
        base = 0
        for p in range(n_parts):
            cp = part_channels[p]
            zcol = jnp.zeros((H2 + 2 * pad, pad * cp), dt)
            xpad_ref[:, base:base + pad * cp] = zcol
            xpad_ref[:, base + (pad + W2) * cp:base + Wj * cp] = zcol
            xpad_ref[pad:pad + H2, base + pad * cp:base + (pad + W2) * cp] = x_refs[p][0]
            base += Wj * cp

        # ---- K matmuls, one per kh; LHS = free sublane slice of the scratch ----
        acc = jnp.zeros((H2, W2 * C_out), jnp.float32)
        for kh in range(K):
            acc = acc + jnp.dot(xpad_ref[kh:kh + H2, :], rhs_ref[kh],
                                preferred_element_type=jnp.float32)

        y = jnp.maximum(acc + b_ref[...], 0.0)                          # bias + ReLU

        if res_from_inputs or n_res:
            r0, r1 = (x_refs if res_from_inputs else res_refs)
            u = r0[0].reshape(H2, W2, Ch).astype(jnp.float32)
            s = r1[0].reshape(H2, W2, Ch).astype(jnp.float32)
            resid = jnp.concatenate([u, s], axis=-1).reshape(H2, W2 * C_out)
            y = jnp.maximum(y + resid, 0.0)                             # + residual, ReLU

        o_ref[0] = y.astype(o_ref.dtype)

    return kernel


def conv5x5_banded(x_parts, part_channels, rhs, b_row, *, residual_parts=None,
                   K=5, out_dtype=jnp.float32, interpret=False):
    N, H2, _ = x_parts[0].shape
    W2 = x_parts[0].shape[2] // part_channels[0]
    C_out = b_row.shape[-1] // W2
    pad = (K - 1) // 2
    Ch = C_out // 2
    D = rhs.shape[1]

    add_res = residual_parts is not None
    res_from_inputs = (add_res and len(x_parts) == 2
                       and all(xp is rp for xp, rp in zip(x_parts, residual_parts)))
    n_res = 2 if (add_res and not res_from_inputs) else 0

    in_specs, args = [], []
    for xp, cp in zip(x_parts, part_channels):
        in_specs.append(pl.BlockSpec((1, H2, W2 * cp), lambda n: (n, 0, 0)))
        args.append(xp)
    in_specs.append(pl.BlockSpec(rhs.shape, lambda n: (0, 0, 0)))
    args.append(rhs)
    in_specs.append(pl.BlockSpec((1, W2 * C_out), lambda n: (0, 0)))
    args.append(b_row)
    if n_res:
        for rp in residual_parts:
            in_specs.append(pl.BlockSpec((1, H2, W2 * Ch), lambda n: (n, 0, 0)))
            args.append(rp)

    cparams = None if interpret else pltpu.CompilerParams(
        dimension_semantics=("parallel",),
        vmem_limit_bytes=48 * 1024 * 1024)

    return pl.pallas_call(
        _make_conv_kernel(H2, W2, tuple(part_channels), C_out, K, n_res,
                          res_from_inputs),
        out_shape=jax.ShapeDtypeStruct((N, H2, W2 * C_out), out_dtype),
        grid=(N,),
        in_specs=in_specs,
        out_specs=pl.BlockSpec((1, H2, W2 * C_out), lambda n: (n, 0, 0)),
        scratch_shapes=[pltpu.VMEM((H2 + 2 * pad, D), x_parts[0].dtype)],
        compiler_params=cparams,
        interpret=interpret,
    )(*args)


# ----------------------------------------------------------------------------
# Full upsample_block forward (NCHW in / NCHW out, like the PyTorch module).
# Internally all activations are channel-flattened (N, H, W*C) so the HBM /
# VMEM lane axis is dense.
# ----------------------------------------------------------------------------
def _pick_tile_h(H, row_bytes, target_bytes=2 << 20):
    # size deconv tiles by bytes (~2 MiB per buffered block), rows multiple of 8
    if H * row_bytes <= target_bytes or H <= 8:
        return H
    th = int(min(H, max(8, (target_bytes // row_bytes) // 8 * 8)))
    while th > 8 and H % th != 0:
        th -= 8
    return th if H % th == 0 else H


def upsample_block_forward(x_nchw, skip_nchw, params, *,
                           compute_dtype=jnp.bfloat16, tile_h=None,
                           interpret=False):
    N, Cin, H, W = x_nchw.shape
    Wd = params["deconv_w"]            # (Cin, Ch, 2, 2)  ConvTranspose2d layout
    bd = params["deconv_b"]            # (Ch,)
    alpha = params["prelu_a"]          # (Ch,)
    Ch = Wd.shape[1]
    C_out = 2 * Ch
    H2, W2 = 2 * H, 2 * W
    n_convs = len(params["conv_ws"])
    K = params["conv_ws"][0].shape[-1]
    pad = (K - 1) // 2

    # lane-dense channel-flattened activations
    x_flat = jnp.transpose(x_nchw, (0, 2, 3, 1)).reshape(N, H, W * Cin).astype(compute_dtype)
    skip = jnp.transpose(skip_nchw, (0, 2, 3, 1)).reshape(N, H2, W2 * Ch).astype(compute_dtype)

    # ---- 1) ConvTranspose2d + bias + PReLU (+ pixel shuffle), fused ----
    r_dec = _deconv_banded_rhs(Wd.astype(jnp.float32), W).astype(compute_dtype)
    b_dec = jnp.tile(bd.astype(jnp.float32), 2 * W).reshape(1, 2 * W * Ch)
    a_dec = jnp.tile(alpha.astype(jnp.float32), 2 * W).reshape(1, 2 * W * Ch)
    th = tile_h if tile_h is not None else _pick_tile_h(H, W * Cin * x_flat.dtype.itemsize)
    up = deconv_prelu(x_flat, r_dec, b_dec, a_dec, Ch=Ch, tile_h=th,
                      out_dtype=compute_dtype, interpret=interpret)   # (N, H2, W2*Ch)

    # ---- 2)+3)+4) concat + conv stack + residual add/ReLU (all fused) ----
    parts, part_channels = [up, skip], [Ch, Ch]
    cur = None
    for i in range(n_convs):
        Wc = params["conv_ws"][i].astype(jnp.float32)                 # (C_out, Cin_tot, K, K)
        bc = params["conv_bs"][i].astype(jnp.float32)
        rhs = _conv_banded_rhs(Wc, part_channels, W2, pad).astype(compute_dtype)
        b_row = jnp.tile(bc, W2).reshape(1, W2 * C_out)
        is_last = (i == n_convs - 1)
        cur = conv5x5_banded(parts, part_channels, rhs, b_row,
                             residual_parts=[up, skip] if is_last else None,
                             K=K,
                             out_dtype=jnp.float32 if is_last else compute_dtype,
                             interpret=interpret)
        parts, part_channels = [cur], [C_out]

    out = cur.reshape(N, H2, W2, C_out)          # free reshape (same layout)
    return jnp.transpose(out, (0, 3, 1, 2))      # back to NCHW


# ----------------------------------------------------------------------------
# Pure-JAX reference (NCHW, same math as the PyTorch module) for validation
# ----------------------------------------------------------------------------
def ref_forward(x_nchw, skip_nchw, params):
    Wd, bd, alpha = params["deconv_w"], params["deconv_b"], params["prelu_a"]
    N, Cin, H, W = x_nchw.shape
    Ch = Wd.shape[1]
    y = jnp.einsum("nchw,cokl->nohwkl", x_nchw, Wd,
                   precision=jax.lax.Precision.HIGHEST)
    y = jnp.transpose(y, (0, 1, 2, 4, 3, 5)).reshape(N, Ch, 2 * H, 2 * W)
    y = y + bd[None, :, None, None]
    y = jnp.where(y >= 0.0, y, alpha[None, :, None, None] * y)        # PReLU
    x = jnp.concatenate([y, skip_nchw], axis=1)
    residual = x
    for Wc, bc in zip(params["conv_ws"], params["conv_bs"]):
        x = jax.lax.conv_general_dilated(
            x, Wc, window_strides=(1, 1), padding=((2, 2), (2, 2)),
            dimension_numbers=("NCHW", "OIHW", "NCHW"),
            precision=jax.lax.Precision.HIGHEST)
        x = x + bc[None, :, None, None]
        x = jnp.maximum(x, 0.0)
    x = jnp.maximum(x + residual, 0.0)
    return x


if __name__ == "__main__":
    in_channels, out_channels, n_convs = 16, 16, 2
    N, H, W = 2, 16, 16
    Ch = out_channels // 2                      # deconv / skip channels

    key = jax.random.PRNGKey(0)
    ks = jax.random.split(key, 4 + 2 * n_convs)
    x = jax.random.normal(ks[0], (N, in_channels, H, W), jnp.float32)
    skip = jax.random.normal(ks[1], (N, Ch, 2 * H, 2 * W), jnp.float32)

    params = {
        "deconv_w": 0.2 * jax.random.normal(ks[2], (in_channels, Ch, 2, 2), jnp.float32),
        "deconv_b": 0.1 * jax.random.normal(ks[3], (Ch,), jnp.float32),
        "prelu_a": 0.25 * jnp.ones((Ch,), jnp.float32),   # PyTorch PReLU default init
        "conv_ws": [0.05 * jax.random.normal(ks[4 + 2 * i],
                                             (out_channels, out_channels, 5, 5),
                                             jnp.float32) for i in range(n_convs)],
        "conv_bs": [0.1 * jax.random.normal(ks[5 + 2 * i],
                                            (out_channels,), jnp.float32)
                    for i in range(n_convs)],
    }

    ref = ref_forward(x, skip, params)

    # (a) compiled TPU run, f32 operands (tolerance covers MXU default precision)
    out_f32 = jax.block_until_ready(
        upsample_block_forward(x, skip, params, compute_dtype=jnp.float32))
    assert out_f32.shape == (N, out_channels, 2 * H, 2 * W)
    np.testing.assert_allclose(np.asarray(out_f32), np.asarray(ref),
                               rtol=2e-2, atol=2e-2)

    # (b) compiled TPU run, default bf16 MXU operands (f32 accumulation and
    #     f32 bias/PReLU/ReLU epilogue); bf16 storage of intermediates is the
    #     only rounding vs. the f32 reference.
    out_bf16 = jax.block_until_ready(upsample_block_forward(x, skip, params))
    np.testing.assert_allclose(np.asarray(out_bf16), np.asarray(ref),
                               rtol=1e-1, atol=1e-1)

    print("KERNEL_OK")
</pallas_src>

<mosaic_0001>
module attributes {stable_mosaic.version = 11 : i64} {
  func.func @kernel(%arg0: i32, %arg1: i32, %arg2: memref<1x16x256xf32, #tpu.memory_space<vmem>>, %arg3: memref<2x256x256xf32, #tpu.memory_space<vmem>>, %arg4: memref<1x256xf32, #tpu.memory_space<vmem>>, %arg5: memref<1x256xf32, #tpu.memory_space<vmem>>, %arg6: memref<1x32x256xf32, #tpu.memory_space<vmem>>) attributes {dimension_semantics = [#tpu.dimension_semantics<parallel>, #tpu.dimension_semantics<parallel>], iteration_bounds = array<i64: 2, 1>, scalar_prefetch = 0 : i64, scratch_operands = 0 : i64, tpu.core_type = #tpu.core_type<tc>, window_params = [{transform_indices = @transform_0, window_bounds = array<i64: 1, 16, 256>}, {pipeline_mode = #tpu.pipeline_mode<synchronous>, transform_indices = @transform_1, window_bounds = array<i64: 2, 256, 256>}, {pipeline_mode = #tpu.pipeline_mode<synchronous>, transform_indices = @transform_2, window_bounds = array<i64: 1, 256>}, {pipeline_mode = #tpu.pipeline_mode<synchronous>, transform_indices = @transform_3, window_bounds = array<i64: 1, 256>}, {transform_indices = @transform_4, window_bounds = array<i64: 1, 32, 256>}]} {
    %c0 = arith.constant 0 : index
    %c0_0 = arith.constant 0 : index
    %c0_1 = arith.constant 0 : index
    %0 = vector.load %arg2[%c0, %c0_0, %c0_1] : memref<1x16x256xf32, #tpu.memory_space<vmem>>, vector<1x16x256xf32>
    %1 = vector.shape_cast %0 : vector<1x16x256xf32> to vector<16x256xf32>
    %c0_2 = arith.constant 0 : index
    %c0_3 = arith.constant 0 : index
    %2 = vector.load %arg4[%c0_2, %c0_3] : memref<1x256xf32, #tpu.memory_space<vmem>>, vector<1x256xf32>
    %c0_4 = arith.constant 0 : index
    %c0_5 = arith.constant 0 : index
    %3 = vector.load %arg5[%c0_4, %c0_5] : memref<1x256xf32, #tpu.memory_space<vmem>>, vector<1x256xf32>
    %c0_6 = arith.constant 0 : index
    %c0_7 = arith.constant 0 : index
    %c0_8 = arith.constant 0 : index
    %4 = vector.load %arg3[%c0_6, %c0_7, %c0_8] : memref<2x256x256xf32, #tpu.memory_space<vmem>>, vector<1x256x256xf32>
    %5 = vector.shape_cast %4 : vector<1x256x256xf32> to vector<256x256xf32>
    %cst = arith.constant dense<0.000000e+00> : vector<16x256xf32>
    %6 = tpu.matmul %1, %5, %cst {dimension_numbers = #tpu.dot_dimension_numbers<[1], [0], [0], [1], [0, 0, 1, 1], [], []>} : vector<16x256xf32>, vector<256x256xf32>, vector<16x256xf32> -> vector<16x256xf32>
    %7 = vector.broadcast %2 : vector<1x256xf32> to vector<16x256xf32>
    %8 = arith.addf %6, %7 : vector<16x256xf32>
    %cst_9 = arith.constant 0.000000e+00 : f32
    %9 = vector.broadcast %cst_9 : f32 to vector<16x256xf32>
    %10 = arith.cmpf oge, %8, %9 : vector<16x256xf32>
    %11 = vector.broadcast %3 : vector<1x256xf32> to vector<16x256xf32>
    %12 = arith.mulf %11, %8 : vector<16x256xf32>
    %13 = arith.select %10, %8, %12 : vector<16x256xi1>, vector<16x256xf32>
    %c1 = arith.constant 1 : index
    %c0_10 = arith.constant 0 : index
    %c0_11 = arith.constant 0 : index
    %14 = vector.load %arg3[%c1, %c0_10, %c0_11] : memref<2x256x256xf32, #tpu.memory_space<vmem>>, vector<1x256x256xf32>
    %15 = vector.shape_cast %14 : vector<1x256x256xf32> to vector<256x256xf32>
    %cst_12 = arith.constant dense<0.000000e+00> : vector<16x256xf32>
    %16 = tpu.matmul %1, %15, %cst_12 {dimension_numbers = #tpu.dot_dimension_numbers<[1], [0], [0], [1], [0, 0, 1, 1], [], []>} : vector<16x256xf32>, vector<256x256xf32>, vector<16x256xf32> -> vector<16x256xf32>
    %17 = vector.broadcast %2 : vector<1x256xf32> to vector<16x256xf32>
    %18 = arith.addf %16, %17 : vector<16x256xf32>
    %cst_13 = arith.constant 0.000000e+00 : f32
    %19 = vector.broadcast %cst_13 : f32 to vector<16x256xf32>
    %20 = arith.cmpf oge, %18, %19 : vector<16x256xf32>
    %21 = vector.broadcast %3 : vector<1x256xf32> to vector<16x256xf32>
    %22 = arith.mulf %21, %18 : vector<16x256xf32>
    %23 = arith.select %20, %18, %22 : vector<16x256xi1>, vector<16x256xf32>
    %24 = vector.shape_cast %13 : vector<16x256xf32> to vector<16x1x256xf32>
    %25 = vector.shape_cast %23 : vector<16x256xf32> to vector<16x1x256xf32>
    %26 = tpu.concatenate %24, %25 in 1 : vector<16x1x256xf32>, vector<16x1x256xf32> -> vector<16x2x256xf32>
    %27 = vector.shape_cast %26 : vector<16x2x256xf32> to vector<32x256xf32>
    %c0_14 = arith.constant 0 : index
    %c0_15 = arith.constant 0 : index
    %c0_16 = arith.constant 0 : index
    %28 = vector.load %arg6[%c0_14, %c0_15, %c0_16] : memref<1x32x256xf32, #tpu.memory_space<vmem>>, vector<1x32x256xf32>
    %29 = vector.shape_cast %28 : vector<1x32x256xf32> to vector<32x256xf32>
    %30 = vector.shape_cast %27 : vector<32x256xf32> to vector<1x32x256xf32>
    tpu.vector_store %arg6[%c0_14, %c0_15, %c0_16], %30 {strides = array<i32>} : memref<1x32x256xf32, #tpu.memory_space<vmem>>, vector<1x32x256xf32>,
    return
  }
  func.func @transform_0(%arg0: i32, %arg1: i32) -> (i32, i32, i32) {
    %c0_i32 = arith.constant 0 : i32
    %c0_i32_0 = arith.constant 0 : i32
    return %arg0, %arg1, %c0_i32 : i32, i32, i32
  }
  func.func @transform_1(%arg0: i32, %arg1: i32) -> (i32, i32, i32) {
    %c0_i32 = arith.constant 0 : i32
    %c0_i32_0 = arith.constant 0 : i32
    %c0_i32_1 = arith.constant 0 : i32
    %c0_i32_2 = arith.constant 0 : i32
    return %c0_i32, %c0_i32_0, %c0_i32_1 : i32, i32, i32
  }
  func.func @transform_2(%arg0: i32, %arg1: i32) -> (i32, i32) {
    %c0_i32 = arith.constant 0 : i32
    %c0_i32_0 = arith.constant 0 : i32
    %c0_i32_1 = arith.constant 0 : i32
    return %c0_i32, %c0_i32_0 : i32, i32
  }
  func.func @transform_3(%arg0: i32, %arg1: i32) -> (i32, i32) {
    %c0_i32 = arith.constant 0 : i32
    %c0_i32_0 = arith.constant 0 : i32
    %c0_i32_1 = arith.constant 0 : i32
    return %c0_i32, %c0_i32_0 : i32, i32
  }
  func.func @transform_4(%arg0: i32, %arg1: i32) -> (i32, i32, i32) {
    %c0_i32 = arith.constant 0 : i32
    %c0_i32_0 = arith.constant 0 : i32
    return %arg0, %arg1, %c0_i32 : i32, i32, i32
  }
}

</mosaic_0001>

<bundles_post_ra>
// kernel: tpu_custom_call.1
= control target key start
LH: loop header
LB: loop body
LE: loop exit
PB: predicated region body
PF: predicated region fallthrough
CT: control target
= control target key end

     0   :  { %s1837_s0 = inlined_call_operand.hbm [shape: f32[2,16,256], index: 0, kind: input, shape index: {}]   ;;  %s1838_s1 = inlined_call_operand.hbm [shape: f32[2,256,256], index: 1, kind: input, shape index: {}]   ;;  %s1839_s2 = inlined_call_operand.hbm [shape: f32[1,256], index: 2, kind: input, shape index: {}]   ;;  %s1840_s3 = inlined_call_operand.vmem [shape: f32[1,256], index: 3, kind: input, shape index: {}]   ;;  %s1841_s4 = inlined_call_operand.hbm [shape: f32[2,32,256], index: 4, kind: output, shape index: {}]  }
   0x1   :  { %1843 = sst [smem:[#allocation12_spill]] %s1838_s1 }
   0x2   :  { %9 = vsyncpa [#allocation3], 0 }
   0x3   :  { %11 = vsyncpa [#allocation3 + $0x1], 0 }
   0x4   :  { %12 = vsyncpa [#allocation6], 0 }
   0x5   :  { %13 = vsyncpa [#allocation4], 0 }
   0x6   :  { %15 = vsyncpa [#allocation4 + $0x1], 0  ;;  %s1417_s15 = smov 0   ;;  %s1419_s16 = smov 0  }
   0x7   :  { %s1421_s17 = smov 0   ;;  %s1423_s18 = smov 0  }
   0x8   :  { %s1425_s19 = smov 0   ;;  %s1427_s20 = smov 0  }
   0x9 LB: > { %s1100_s21 = sadd.s32 4294967295, %s1384_s20   ;;  %s1101_s22 = sadd.s32 4294967294, %s1384_s20   ;;  %s1384_s20 = sphi %s1427_s20, %s21_s20   ;;  %s1380_s19 = sphi %s1425_s19, %s1859_s19   ;;  %s1376_s18 = sphi %s1423_s18, %s1858_s18   ;;  %s1372_s17 = sphi %s1421_s17, %s1857_s17   ;;  %s1368_s16 = sphi %s1419_s16, %s1856_s16   ;;  %s1364_s15 = sphi %s1417_s15, %s1855_s15  }
   0xa   : > { %p55_p0 = scmp.ne.s32.totalorder %s1368_s16, %s1364_s15  ;;  %p1451_p1 = scmp.eq.s32.totalorder %s1100_s21, 0 }
   0xb   : > { %p150_p2 = scmp.eq.s32.totalorder %s1101_s22, 1  ;;  %p1102_p4 = scmp.ge.s32.totalorder %s1384_s20, 1 }
   0xc   : > { %p1457_p3 = por %p1451_p1, %p55_p0  ;;  %p157_p6 = scmp.lt.s32.totalorder %s1384_s20, 3 }
   0xd   : > { %p1462_p5 = por %p150_p2, %p55_p0  ;;  %s1847_s1 = sld [smem:[#allocation12_spill]] }
   0xe   : > { %p1470_p7 = pnand %p1102_p4, %p157_p6  ;;  %s1386_s30 = smov [#allocation5]  }
   0xf   : > { %s170_s5 = sshll.u32 %s1386_s30, 4  ;;  %p1105_p10 = scmp.ge.s32.totalorder %s1384_s20, 2  ;;  %s171_s5 = int_to_ptr.vmem [resolvable:$true] %s170_s5 }
  0x10   : > { %p1133_p8 = pneg %p1470_p7  ;;  %s183_s8 = sshll.u32 %s1839_s2, 4  ;;  %s184_s8 = int_to_ptr.hbm [resolvable:$true] %s183_s8 }
  0x11   : > { %s1842_s9 = smov 256   ;;  %s1388_s10 = smov 16  }
  0x12   : > { %p1134_p9 = pnand %p1133_p8, %p1451_p1  ;;  %s1389_s11 = smov [#allocation7]  }
  0x13   : > { %s168_s28 = sshll.u32 %s1847_s1, 4  ;;  %s185_s12 = sshll.u32 %s1389_s11, 4  ;;  %s169_s28 = int_to_ptr.hbm [resolvable:$true] %s168_s28  ;;  %s186_s12 = int_to_ptr.vmem [resolvable:$true] %s185_s12 }
  0x14   : > { %1136 = dma.hbm_to_vmem [thread:$0]  (!%p1134_p9), %s169_s28, 16384, %s171_s5, [#allocation6], %s1842_s9, %s1842_s9, %s1388_s10  }
  0x15   : > { %1139 = dma.hbm_to_vmem [thread:$0]  (!%p1134_p9), %s184_s8, 32, %s186_s12, [#allocation6]  }
  0x16   : > { %p144_p11 = scmp.eq.s32.totalorder %s1100_s21, 1  ;;  %s33_s13 = sadd.s32 1, %s1380_s19 }
  0x17   : > { %p35_p12 = scmp.ge.s32.totalorder %s33_s13, 2  ;;  %s42_s14 = sadd.s32 1, %s1372_s17 }
  0x18   : > { %p49_p13 = scmp.ne.s32.totalorder %s1372_s17, %s1368_s16  ;;  %p50_p0 = scmp.eq.s32.totalorder %s1384_s20, 0 }
  0x19   : > { %s1861_s13 = smov (%p35_p12, %s33_s13), 0  ;;  %p1150_p4 = scmp.lt.s32.totalorder %s1384_s20, 2 }
  0x1a   : > { %p1492_p2 = por %p144_p11, %p49_p13  ;;  %s37_s26 = ssub.s32 %s1380_s19, %s1861_s13 }
  0x1b   : > { %s199_s27 = sand.u32 1, %s1372_s17   ;;  %p40_p6 = scmp.eq.s32.totalorder %s37_s26, 0 }
  0x1c   : > { %p51_p8 = por %p50_p0, %p49_p13  ;;  %s1106_s28 = sshll.u32 %s199_s27, 5 }
  0x1d   : > { %s1119_s21 = sshll.u32 %s1380_s19, 5  ;;  %s203_s11 = scalar_lea.vmem [#allocation2], %s1106_s28 }
  0x1e   : > { %s1502_s30 = scalar_select %p40_p6, %s1372_s17, %s42_s14  }
  0x1f   : > { %s211_s7 = scalar_lea.hbm %s1837_s0, %s1119_s21  ;;  %s214_s12 = sshll.u32 %s203_s11, 4  ;;  %s215_s12 = int_to_ptr.vmem [resolvable:$true] %s214_s12 }
  0x20   : > { %s212_s8 = sshll.u32 %s211_s7, 4  ;;  %p1141_p9 = pnand %p1150_p4, %p51_p8  ;;  %s213_s8 = int_to_ptr.hbm [resolvable:$true] %s212_s8 }
  0x21   : > { %s200_s9 = scalar_lea.sflag [#allocation3], %s199_s27  ;;  %s1850_s1 = smov 256  }
  0x22   : > { %1143 = dma.hbm_to_vmem [thread:$0]  (!%p1141_p9), %s213_s8, 512, %s215_s12, %s200_s9, %s1850_s1, %s1850_s1, %s1388_s10  }
  0x23   : > { %226 = sbr.rel (%p1470_p7) target bundleno = 305 (0x131), region = 36  ;;  %s1515_s14 = sand.u32 (!%p1470_p7), 1, %s1368_s16  }
  0x24   : > { %s1110_s26 = sshll.u32 (!%p1470_p7), %s1515_s14, 5  ;;  %s229_s28 = scalar_lea.sflag (!%p1470_p7), [#allocation3], %s1515_s14 }
  0x25   : > { %s1519_s21 = scalar_lea.vmem (!%p1470_p7), [#allocation2], %s1110_s26 }
  0x28   : > { %1351 = dma.done.wait (%p1457_p3), %s229_s28, 512  }
  0x29   : > { %1353 = vsyncadd (%p1457_p3), %s229_s28, 4294966784 }
  0x2a   : > { %1355 = dma.done.wait (%p1451_p1), [#allocation6], 16416  }
  0x2b   : > { %1357 = vsyncadd (%p1451_p1), [#allocation6], 4294950880  ;;  %v307_v0 = vld [vmem:[#allocation5 + $0xf8] sm:$0xff]  ;;  %v305_v1 = vld [vmem:[#allocation5 + $0xe8] sm:$0xff]  ;;  %vm631_vm2 = vcmask 1041409   ;;  %vm634_vm3 = vcmask 1042434  }
  0x2c   : > { %v339_v2 = vld [vmem:[#allocation5 + $0x1f8] sm:$0xff]  ;;  %391 = vmatpush.msra.mxu2 %v307_v0  ;;  %v337_v3 = vld [vmem:[#allocation5 + $0x1e8] sm:$0xff]  ;;  %v306_v4 = vld [vmem:[#allocation5 + $0xf0] sm:$0xff]  ;;  %vm629_vm4 = vcmask 1040384   ;;  %vm637_vm5 = vcmask 1043459   ;;  %vm640_vm6 = vcmask 1044484  }
  0x2d   : > { %414 = vmatpush.msra.mxu3 %v339_v2  ;;  %v303_v5 = vld [vmem:[#allocation5 + $0xd8] sm:$0xff]  ;;  %345 = vmatpush.msra.mxu0 %v306_v4  ;;  %v304_v7 = vld [vmem:[#allocation5 + $0xe0] sm:$0xff]  ;;  %v301_v8 = vld [vmem:[#allocation5 + $0xc8] sm:$0xff]  ;;  %vm643_vm7 = vcmask 1045509   ;;  %vm646_vm8 = vcmask 1046534   ;;  %vm649_vm9 = vcmask 1046528  }
  0x2e   : > { %v335_v6 = vld [vmem:[#allocation5 + $0x1d8] sm:$0xff]  ;;  %392 = vmatpush.msra.mxu2 %v305_v1  ;;  %v338_v9 = vld [vmem:[#allocation5 + $0x1f0] sm:$0xff]  ;;  %v333_v10 = vld [vmem:[#allocation5 + $0x1c8] sm:$0xff]  ;;  %vm911_vm14 = vcmask 1041408   ;;  %s1113_s24 = sshll.u32 %s1515_s14, 6  ;;  %s1120_s9 = sshll.u32 %s1376_s18, 6 }
  0x2f   : > { %415 = vmatpush.msra.mxu3 %v337_v3  ;;  %346 = vmatpush.msra.mxu0 %v304_v7  ;;  %v302_v11 = vld [vmem:[#allocation5 + $0xd0] sm:$0xff]  ;;  %v336_v12 = vld [vmem:[#allocation5 + $0x1e0] sm:$0xff]  ;;  %v299_v15 = vld [vmem:[#allocation5 + $0xb8] sm:$0xff]  ;;  %s1753_s29 = scalar_lea.vmem [#allocation8], %s1113_s24  ;;  %s990_s5 = scalar_lea.hbm %s1841_s4, %s1120_s9 }
  0x30   : > { %368 = vmatpush.msra.mxu1 %v338_v9  ;;  %393 = vmatpush.msra.mxu2 %v303_v5  ;;  %v300_v13 = vld [vmem:[#allocation5 + $0xc0] sm:$0xff]  ;;  %v334_v14 = vld [vmem:[#allocation5 + $0x1d0] sm:$0xff]  ;;  %v331_v16 = vld [vmem:[#allocation5 + $0x1b8] sm:$0xff]  ;;  %s991_s6 = sshll.u32 %s1753_s29, 4  ;;  %s993_s7 = sshll.u32 %s990_s5, 4  ;;  %s992_s6 = int_to_ptr.vmem [resolvable:$true] %s991_s6  ;;  %s994_s7 = int_to_ptr.hbm [resolvable:$true] %s993_s7 }
  0x31   : > { %416 = vmatpush.msra.mxu3 %v335_v6  ;;  %347 = vmatpush.msra.mxu0 %v302_v11  ;;  %v298_v17 = vld [vmem:[#allocation5 + $0xb0] sm:$0xff]  ;;  %v332_v18 = vld [vmem:[#allocation5 + $0x1c0] sm:$0xff]  ;;  %v297_v19 = vld [vmem:[#allocation5 + $0xa8] sm:$0xff]  ;;  %s976_s18 = scalar_lea.sflag [#allocation4], %s1515_s14  ;;  %s1312_s8 = sshra.s32 %s994_s7, 4  ;;  %s1313_s8 = int_to_ptr.hbm [resolvable:$true] %s1312_s8 }
  0x32   : > { %369 = vmatpush.msra.mxu1 %v336_v12  ;;  %394 = vmatpush.msra.mxu2 %v301_v8  ;;  %v329_v20 = vld [vmem:[#allocation5 + $0x1a8] sm:$0xff]  ;;  %v296_v21 = vld [vmem:[#allocation5 + $0xa0] sm:$0xff]  ;;  %v330_v22 = vld [vmem:[#allocation5 + $0x1b0] sm:$0xff]  ;;  %s1314_s11 = scalar_lea.hbm %s1313_s8, 64  ;;  %s1318_s28 = scalar_lea.hbm %s1841_s4, 128 }
  0x33   : > { %417 = vmatpush.msra.mxu3 %v333_v10  ;;  %348 = vmatpush.msra.mxu0 %v300_v13  ;;  %v295_v23 = vld [vmem:[#allocation5 + $0x98] sm:$0xff]  ;;  %v294_v25 = vld [vmem:[#allocation5 + $0x90] sm:$0xff]  ;;  %v328_v26 = vld [vmem:[#allocation5 + $0x1a0] sm:$0xff]  ;;  %p1315_p1 = scmp.ne.s32.totalorder %s1313_s8, %s1314_s11  ;;  %p1319_p11 = scmp.lt.s32.totalorder %s1313_s8, %s1841_s4 }
  0x34   : > { %370 = vmatpush.msra.mxu1 %v334_v14  ;;  %395 = vmatpush.msra.mxu2 %v299_v15  ;;  %v327_v24 = vld [vmem:[#allocation5 + $0x198] sm:$0xff]  ;;  %v293_v27 = vld [vmem:[#allocation5 + $0x88] sm:$0xff]  ;;  %v292_v29 = vld [vmem:[#allocation5 + $0x80] sm:$0xff]  ;;  %p1320_p12 = scmp.lt.s32.totalorder %s1318_s28, %s1314_s11 }
  0x35   : > { %418 = vmatpush.msra.mxu3 %v331_v16  ;;  %349 = vmatpush.msra.mxu0 %v298_v17  ;;  %v325_v28 = vld [vmem:[#allocation5 + $0x188] sm:$0xff]  ;;  %v326_v30 = vld [vmem:[#allocation5 + $0x190] sm:$0xff]  ;;  %v291_v31 = vld [vmem:[#allocation5 + $0x78] sm:$0xff]  ;;  %p1316_p3 = pnand %p1315_p1, %p1492_p2 }
  0x36   : > { %371 = vmatpush.msra.mxu1 %v332_v18  ;;  %396 = vmatpush.msra.mxu2 %v297_v19  ;;  %v323_v32 = vld [vmem:[#allocation5 + $0x178] sm:$0xff]  ;;  %v290_v33 = vld [vmem:[#allocation5 + $0x70] sm:$0xff]  ;;  %v324_v34 = vld [vmem:[#allocation5 + $0x180] sm:$0xff]  ;;  %p1321_p13 = por %p1320_p12, %p1319_p11 }
  0x37   : > { %419 = vmatpush.msra.mxu3 %v329_v20  ;;  %350 = vmatpush.msra.mxu0 %v296_v21  ;;  %v289_v35 = vld [vmem:[#allocation5 + $0x68] sm:$0xff]  ;;  %v288_v37 = vld [vmem:[#allocation5 + $0x60] sm:$0xff]  ;;  %v322_v38 = vld [vmem:[#allocation5 + $0x170] sm:$0xff]  ;;  %p1317_p7 = pneg %p1316_p3 }
  0x38   : > { %372 = vmatpush.msra.mxu1 %v330_v22  ;;  %397 = vmatpush.msra.mxu2 %v295_v23  ;;  %v321_v36 = vld [vmem:[#allocation5 + $0x168] sm:$0xff]  ;;  %v287_v39 = vld [vmem:[#allocation5 + $0x58] sm:$0xff]  ;;  %v286_v41 = vld [vmem:[#allocation5 + $0x50] sm:$0xff] }
  0x39   : > { %420 = vmatpush.msra.mxu3 %v327_v24  ;;  %351 = vmatpush.msra.mxu0 %v294_v25  ;;  %v319_v40 = vld [vmem:[#allocation5 + $0x158] sm:$0xff]  ;;  %v320_v42 = vld [vmem:[#allocation5 + $0x160] sm:$0xff]  ;;  %v285_v43 = vld [vmem:[#allocation5 + $0x48] sm:$0xff]  ;;  %p1322_p0 = pnand %p1321_p13, %p1317_p7 }
  0x3a   : > { %373 = vmatpush.msra.mxu1 %v328_v26  ;;  %398 = vmatpush.msra.mxu2 %v293_v27  ;;  %v317_v44 = vld [vmem:[#allocation5 + $0x148] sm:$0xff]  ;;  %v284_v45 = vld [vmem:[#allocation5 + $0x40] sm:$0xff]  ;;  %v318_v46 = vld [vmem:[#allocation5 + $0x150] sm:$0xff] }
  0x3b   : > { %421 = vmatpush.msra.mxu3 %v325_v28  ;;  %352 = vmatpush.msra.mxu0 %v292_v29  ;;  %v283_v47 = vld [vmem:[#allocation5 + $0x38] sm:$0xff]  ;;  %v282_v49 = vld [vmem:[#allocation5 + $0x30] sm:$0xff]  ;;  %v316_v50 = vld [vmem:[#allocation5 + $0x140] sm:$0xff] }
  0x3c   : > { %374 = vmatpush.msra.mxu1 %v326_v30  ;;  %399 = vmatpush.msra.mxu2 %v291_v31  ;;  %v315_v48 = vld [vmem:[#allocation5 + $0x138] sm:$0xff]  ;;  %v281_v51 = vld [vmem:[#allocation5 + $0x28] sm:$0xff]  ;;  %v280_v53 = vld [vmem:[#allocation5 + $0x20] sm:$0xff] }
  0x3d   : > { %422 = vmatpush.msra.mxu3 %v323_v32  ;;  %353 = vmatpush.msra.mxu0 %v290_v33  ;;  %v313_v52 = vld [vmem:[#allocation5 + $0x128] sm:$0xff]  ;;  %v314_v54 = vld [vmem:[#allocation5 + $0x130] sm:$0xff]  ;;  %v279_v55 = vld [vmem:[#allocation5 + $0x18] sm:$0xff] }
  0x3e   : > { %375 = vmatpush.msra.mxu1 %v324_v34  ;;  %400 = vmatpush.msra.mxu2 %v289_v35  ;;  %v311_v56 = vld [vmem:[#allocation5 + $0x118] sm:$0xff]  ;;  %v278_v57 = vld [vmem:[#allocation5 + $0x10] sm:$0xff]  ;;  %v312_v58 = vld [vmem:[#allocation5 + $0x120] sm:$0xff] }
  0x3f   : > { %423 = vmatpush.msra.mxu3 %v321_v36  ;;  %354 = vmatpush.msra.mxu0 %v288_v37  ;;  %v277_v59 = vld [vmem:[#allocation5 + $0x8] sm:$0xff]  ;;  %v486_v61 = vld [vmem:[#allocation5 + $0x2f8] sm:$0xff]  ;;  %v276_v63 = vld [vmem:[#allocation5] sm:$0xff] }
  0x40   : > { %376 = vmatpush.msra.mxu1 %v322_v38  ;;  %401 = vmatpush.msra.mxu2 %v287_v39  ;;  %v309_v60 = vld [vmem:[#allocation5 + $0x108] sm:$0xff]  ;;  %v518_v62 = vld [vmem:[#allocation5 + $0x3f8] sm:$0xff]  ;;  %v310_v0 = vld [vmem:[#allocation5 + $0x110] sm:$0xff] }
  0x41   : > { %424 = vmatpush.msra.mxu3 %v319_v40  ;;  %355 = vmatpush.msra.mxu0 %v286_v41  ;;  %v484_v1 = vld [vmem:[#allocation5 + $0x2e8] sm:$0xff]  ;;  %v485_v3 = vld [vmem:[#allocation5 + $0x2f0] sm:$0xff]  ;;  %v308_v4 = vld [vmem:[#allocation5 + $0x100] sm:$0xff] }
  0x42   : > { %377 = vmatpush.msra.mxu1 %v320_v42  ;;  %402 = vmatpush.msra.mxu2 %v285_v43  ;;  %v516_v2 = vld [vmem:[#allocation5 + $0x3e8] sm:$0xff]  ;;  %v482_v5 = vld [vmem:[#allocation5 + $0x2d8] sm:$0xff]  ;;  %v483_v7 = vld [vmem:[#allocation5 + $0x2e0] sm:$0xff] }
  0x43   : > { %425 = vmatpush.msra.mxu3 %v317_v44  ;;  %356 = vmatpush.msra.mxu0 %v284_v45  ;;  %v514_v6 = vld [vmem:[#allocation5 + $0x3d8] sm:$0xff]  ;;  %v517_v8 = vld [vmem:[#allocation5 + $0x3f0] sm:$0xff]  ;;  %v480_v9 = vld [vmem:[#allocation5 + $0x2c8] sm:$0xff] }
  0x44   : > { %378 = vmatpush.msra.mxu1 %v318_v46  ;;  %403 = vmatpush.msra.mxu2 %v283_v47  ;;  %v512_v10 = vld [vmem:[#allocation5 + $0x3c8] sm:$0xff]  ;;  %v481_v11 = vld [vmem:[#allocation5 + $0x2d0] sm:$0xff]  ;;  %v515_v12 = vld [vmem:[#allocation5 + $0x3e0] sm:$0xff] }
  0x45   : > { %426 = vmatpush.msra.mxu3 %v315_v48  ;;  %357 = vmatpush.msra.mxu0 %v282_v49  ;;  %v478_v13 = vld [vmem:[#allocation5 + $0x2b8] sm:$0xff]  ;;  %v479_v15 = vld [vmem:[#allocation5 + $0x2c0] sm:$0xff]  ;;  %v513_v16 = vld [vmem:[#allocation5 + $0x3d0] sm:$0xff] }
  0x46   : > { %379 = vmatpush.msra.mxu1 %v316_v50  ;;  %404 = vmatpush.msra.mxu2 %v281_v51  ;;  %v510_v14 = vld [vmem:[#allocation5 + $0x3b8] sm:$0xff]  ;;  %v476_v17 = vld [vmem:[#allocation5 + $0x2a8] sm:$0xff]  ;;  %v1530_v19 = vld [vmem:[%s1519_s21] sm:$0xff] }
  0x47   : > { %427 = vmatpush.msra.mxu3 %v313_v52  ;;  %358 = vmatpush.msra.mxu0 %v280_v53  ;;  %v508_v18 = vld [vmem:[#allocation5 + $0x3a8] sm:$0xff]  ;;  %v477_v20 = vld [vmem:[#allocation5 + $0x2b0] sm:$0xff]  ;;  %v474_v21 = vld [vmem:[#allocation5 + $0x298] sm:$0xff] }
  0x48   : > { %380 = vmatpush.msra.mxu1 %v314_v54  ;;  %405 = vmatpush.msra.mxu2 %v279_v55  ;;  %v511_v22 = vld [vmem:[#allocation5 + $0x3c0] sm:$0xff]  ;;  %v506_v23 = vld [vmem:[#allocation5 + $0x398] sm:$0xff]  ;;  %v472_v25 = vld [vmem:[#allocation5 + $0x288] sm:$0xff] }
  0x49   : > { %428 = vmatpush.msra.mxu3 %v311_v56  ;;  %359 = vmatpush.msra.mxu0 %v278_v57  ;;  %v475_v24 = vld [vmem:[#allocation5 + $0x2a0] sm:$0xff]  ;;  %v1534_v26 = vld [vmem:[%s1519_s21 + $0x8] sm:$0xff]  ;;  %v509_v27 = vld [vmem:[#allocation5 + $0x3b0] sm:$0xff] }
  0x4a   : > { %381 = vmatpush.msra.mxu1 %v312_v58  ;;  %406 = vmatpush.msra.mxu2 %v277_v59  ;;  %v504_v28 = vld [vmem:[#allocation5 + $0x388] sm:$0xff]  ;;  %v470_v29 = vld [vmem:[#allocation5 + $0x278] sm:$0xff]  ;;  %v473_v30 = vld [vmem:[#allocation5 + $0x290] sm:$0xff] }
  0x4b   : > { %429 = vmatpush.msra.mxu3 %v309_v60  ;;  %360 = vmatpush.msra.mxu0 %v276_v63  ;;  %v507_v31 = vld [vmem:[#allocation5 + $0x3a0] sm:$0xff]  ;;  %v502_v32 = vld [vmem:[#allocation5 + $0x378] sm:$0xff]  ;;  %v468_v33 = vld [vmem:[#allocation5 + $0x268] sm:$0xff] }
  0x4c   : > { %565 = vmatpush.msrb.mxu2 %v486_v61  ;;  %382 = vmatpush.msra.mxu1 %v310_v0  ;;  %v471_v34 = vld [vmem:[#allocation5 + $0x280] sm:$0xff]  ;;  %v505_v35 = vld [vmem:[#allocation5 + $0x390] sm:$0xff]  ;;  %v500_v36 = vld [vmem:[#allocation5 + $0x368] sm:$0xff] }
  0x4d   : > { %588 = vmatpush.msrb.mxu3 %v518_v62  ;;  %519 = vmatpush.msrb.mxu0 %v485_v3  ;;  %v466_v37 = vld [vmem:[#allocation5 + $0x258] sm:$0xff]  ;;  %v1538_v38 = vld [vmem:[%s1519_s21 + $0x10] sm:$0xff]  ;;  %v503_v40 = vld [vmem:[#allocation5 + $0x380] sm:$0xff] }
  0x4e   : > { %566 = vmatpush.msrb.mxu2 %v484_v1  ;;  %383 = vmatpush.msra.mxu1 %v308_v4  ;;  %v469_v39 = vld [vmem:[#allocation5 + $0x270] sm:$0xff]  ;;  %v464_v41 = vld [vmem:[#allocation5 + $0x248] sm:$0xff]  ;;  %v498_v42 = vld [vmem:[#allocation5 + $0x358] sm:$0xff] }
  0x4f   : > { %589 = vmatpush.msrb.mxu3 %v516_v2  ;;  %520 = vmatpush.msrb.mxu0 %v483_v7  ;;  %v273_v43 = vld [vmem:[%s1519_s21 + $0x18] sm:$0xff]  ;;  %v467_v44 = vld [vmem:[#allocation5 + $0x260] sm:$0xff]  ;;  %v501_v45 = vld [vmem:[#allocation5 + $0x370] sm:$0xff] }
  0x50   : > { %567 = vmatpush.msrb.mxu2 %v482_v5  ;;  %542 = vmatpush.msrb.mxu1 %v517_v8  ;;  %v462_v46 = vld [vmem:[#allocation5 + $0x238] sm:$0xff]  ;;  %v496_v47 = vld [vmem:[#allocation5 + $0x348] sm:$0xff]  ;;  %v465_v48 = vld [vmem:[#allocation5 + $0x250] sm:$0xff] }
  0x51   : > { %590 = vmatpush.msrb.mxu3 %v514_v6  ;;  %521 = vmatpush.msrb.mxu0 %v481_v11  ;;  %v499_v49 = vld [vmem:[#allocation5 + $0x360] sm:$0xff]  ;;  %v460_v50 = vld [vmem:[#allocation5 + $0x228] sm:$0xff]  ;;  %v494_v51 = vld [vmem:[#allocation5 + $0x338] sm:$0xff] }
  0x52   : > { %568 = vmatpush.msrb.mxu2 %v480_v9  ;;  %543 = vmatpush.msrb.mxu1 %v515_v12  ;;  %v463_v52 = vld [vmem:[#allocation5 + $0x240] sm:$0xff]  ;;  %v497_v53 = vld [vmem:[#allocation5 + $0x350] sm:$0xff]  ;;  %v458_v54 = vld [vmem:[#allocation5 + $0x218] sm:$0xff] }
  0x53   : > { %591 = vmatpush.msrb.mxu3 %v512_v10  ;;  %522 = vmatpush.msrb.mxu0 %v479_v15  ;;  %v492_v55 = vld [vmem:[#allocation5 + $0x328] sm:$0xff]  ;;  %v461_v56 = vld [vmem:[#allocation5 + $0x230] sm:$0xff]  ;;  %v495_v57 = vld [vmem:[#allocation5 + $0x340] sm:$0xff] }
  0x54   : > { %569 = vmatpush.msrb.mxu2 %v478_v13  ;;  %544 = vmatpush.msrb.mxu1 %v513_v16  ;;  %v456_v58 = vld [vmem:[#allocation5 + $0x208] sm:$0xff]  ;;  %v490_v59 = vld [vmem:[#allocation5 + $0x318] sm:$0xff]  ;;  %v459_v60 = vld [vmem:[#allocation5 + $0x220] sm:$0xff] }
  0x55   : > { %592 = vmatpush.msrb.mxu3 %v510_v14  ;;  %407 = vmatmul.f32.vlgmr.msra.gmra.mxu2 %v1530_v19  ;;  %v493_v61 = vld [vmem:[#allocation5 + $0x330] sm:$0xff]  ;;  %v488_v62 = vld [vmem:[#allocation5 + $0x308] sm:$0xff]  ;;  %v491_v0 = vld [vmem:[#allocation5 + $0x320] sm:$0xff] }
  0x56   : > { %570 = vmatpush.msrb.mxu2 %v476_v17  ;;  %523 = vmatpush.msrb.mxu0 %v477_v20  ;;  %v457_v63 = vld [vmem:[#allocation5 + $0x210] sm:$0xff]  ;;  %v455_v1 = vld [vmem:[#allocation5 + $0x200] sm:$0xff]  ;;  %v275_v10 = vld [vmem:[%s1840_s3] sm:$0x3] }
  0x57   : > { %593 = vmatpush.msrb.mxu3 %v508_v18  ;;  %545 = vmatpush.msrb.mxu1 %v511_v22  ;;  %v489_v2 = vld [vmem:[#allocation5 + $0x310] sm:$0xff]  ;;  %v487_v3 = vld [vmem:[#allocation5 + $0x300] sm:$0xff]  ;;  %v1560_v14 = vperm.slane %v275_v10, 1  ;;  %v1563_v18 = vperm.slane %v275_v10, 0 }
  0x58   : > { %571 = vmatpush.msrb.mxu2 %v474_v21  ;;  %524 = vmatpush.msrb.mxu0 %v475_v24  ;;  %v274_v4 = vld [vmem:[#allocation7] sm:$0x3] }
  0x59   : > { %594 = vmatpush.msrb.mxu3 %v506_v23  ;;  %546 = vmatpush.msrb.mxu1 %v509_v27  ;;  %v1551_v5 = vperm.slane %v274_v4, 1  ;;  %v1554_v8 = vperm.slane %v274_v4, 0 }
  0x5a   : > { %572 = vmatpush.msrb.mxu2 %v472_v25  ;;  %430 = vmatmul.f32.vlgmr.msra.gmra.mxu3 %v1534_v26 }
  0x5b   : > { %595 = vmatpush.msrb.mxu3 %v504_v28  ;;  %525 = vmatpush.msrb.mxu0 %v473_v30 }
  0x5c   : > { %573 = vmatpush.msrb.mxu2 %v470_v29  ;;  %547 = vmatpush.msrb.mxu1 %v507_v31 }
  0x5d   : > { %596 = vmatpush.msrb.mxu3 %v502_v32  ;;  %526 = vmatpush.msrb.mxu0 %v471_v34 }
  0x5e   : > { %574 = vmatpush.msrb.mxu2 %v468_v33  ;;  %548 = vmatpush.msrb.mxu1 %v505_v35 }
  0x5f   : > { %597 = vmatpush.msrb.mxu3 %v500_v36  ;;  %361 = vmatmul.f32.vlgmr.msra.gmra.mxu0 %v1530_v19 }
  0x60   : > { %575 = vmatpush.msrb.mxu2 %v466_v37  ;;  %527 = vmatpush.msrb.mxu0 %v469_v39 }
  0x61   : > { %410 = vmatmul.f32.gmra.mxu2 %v1538_v38  ;;  %549 = vmatpush.msrb.mxu1 %v503_v40 }
  0x62   : > { %576 = vmatpush.msrb.mxu2 %v464_v41  ;;  %598 = vmatpush.msrb.mxu3 %v498_v42 }
  0x63   : > { %384 = vmatmul.f32.vlgmr.msra.gmra.mxu1 %v1534_v26  ;;  %433 = vmatmul.f32.gmra.mxu3 %v273_v43 }
  0x64   : > { %528 = vmatpush.msrb.mxu0 %v467_v44  ;;  %550 = vmatpush.msrb.mxu1 %v501_v45 }
  0x65   : > { %577 = vmatpush.msrb.mxu2 %v462_v46  ;;  %599 = vmatpush.msrb.mxu3 %v496_v47 }
  0x66   : > { %529 = vmatpush.msrb.mxu0 %v465_v48  ;;  %551 = vmatpush.msrb.mxu1 %v499_v49 }
  0x67   : > { %578 = vmatpush.msrb.mxu2 %v460_v50  ;;  %600 = vmatpush.msrb.mxu3 %v494_v51 }
  0x68   : > { %530 = vmatpush.msrb.mxu0 %v463_v52  ;;  %552 = vmatpush.msrb.mxu1 %v497_v53 }
  0x69   : > { %579 = vmatpush.msrb.mxu2 %v458_v54  ;;  %601 = vmatpush.msrb.mxu3 %v492_v55 }
  0x6a   : > { %364 = vmatmul.f32.gmra.mxu0 %v1538_v38  ;;  %553 = vmatpush.msrb.mxu1 %v495_v57 }
  0x6b   : > { %531 = vmatpush.msrb.mxu0 %v461_v56  ;;  %580 = vmatpush.msrb.mxu2 %v456_v58 }
  0x6c   : > { %602 = vmatpush.msrb.mxu3 %v490_v59  ;;  %387 = vmatmul.f32.gmra.mxu1 %v273_v43 }
  0x6d   : > { %581 = vmatmul.f32.vlgmr.msrb.gmra.mxu2 %v1530_v19  ;;  %532 = vmatpush.msrb.mxu0 %v459_v60 }
  0x6e   : > { %554 = vmatpush.msrb.mxu1 %v493_v61  ;;  %603 = vmatpush.msrb.mxu3 %v488_v62 }
  0x6f   : > { %604 = vmatmul.f32.vlgmr.msrb.gmra.mxu3 %v1534_v26  ;;  %533 = vmatpush.msrb.mxu0 %v457_v63 }
  0x70   : > { %555 = vmatpush.msrb.mxu1 %v491_v0 }
  0x71   : > { %534 = vmatpush.msrb.mxu0 %v455_v1 }
  0x72   : > { %556 = vmatpush.msrb.mxu1 %v489_v2  ;;  %535 = vmatmul.f32.vlgmr.msrb.gmra.mxu0 %v1530_v19 }
  0x74   : > { %557 = vmatpush.msrb.mxu1 %v487_v3 }
  0x75   : > { %584 = vmatmul.f32.gmra.mxu2 %v1538_v38  ;;  %558 = vmatmul.f32.vlgmr.msrb.gmra.mxu1 %v1534_v26 }
  0x77   : > { %607 = vmatmul.f32.gmra.mxu3 %v273_v43 }
  0x7a   : > { %538 = vmatmul.f32.gmra.mxu0 %v1538_v38 }
  0x7d   : > { %561 = vmatmul.f32.gmra.mxu1 %v273_v43 }
  0xd8   : > { %v408_v6 = vpop.f32.mrf.mxu2 }
  0xd9   : > { %v409_v7 = vadd.f32 %v408_v6, %v1551_v5 }
  0xdc   : > { %v362_v9 = vpop.f32.mrf.mxu0 }
  0xdd   : > { %v431_v11 = vpop.f32.mrf.mxu3  ;;  %v363_v12 = vadd.f32 %v362_v9, %v1554_v8 }
  0xde   : > { %v432_v13 = vadd.f32 %v431_v11, %v409_v7 }
  0xe0   : > { %v385_v15 = vpop.f32.mrf.mxu1  ;;  %v447_v16 = vmul.f32 %v1560_v14, %v432_v13  ;;  %vm438_vm0 = vcmp.ge.f32.partialorder %v432_v13, 0.0 }
  0xe1   : > { %v386_v17 = vadd.f32 %v385_v15, %v363_v12 }
  0xe2   : > { %v451_v20 = vsel %vm438_vm0, %v432_v13, %v447_v16 }
  0xe3   : > { %v446_v21 = vmul.f32 %v1563_v18, %v386_v17  ;;  %vm437_vm1 = vcmp.ge.f32.partialorder %v386_v17, 0.0  ;;  %v627_v24 = vrot.slane %v451_v20, 7 }
  0xe4   : > { %v411_v19 = vpop.f32.mrf.mxu2 }
  0xe5   : > { %v412_v23 = vadd.f32 %v411_v19, %v1551_v5  ;;  %v450_v26 = vsel %vm437_vm1, %v386_v17, %v446_v21 }
  0xe6   : > { %v434_v25 = vpop.f32.mrf.mxu3  ;;  %v632_v30 = vsel %vm631_vm2, %v450_v26, %v627_v24  ;;  %v635_v32 = vsel %vm634_vm3, %v450_v26, %v627_v24  ;;  %v1572_v34 = vsel %vm629_vm4, %v450_v26, %v627_v24  ;;  %v638_v35 = vsel %vm637_vm5, %v450_v26, %v627_v24 }
  0xe7   : > { %v365_v22 = vpop.f32.mrf.mxu0  ;;  %v435_v29 = vadd.f32 %v434_v25, %v412_v23  ;;  %v641_v36 = vsel %vm640_vm6, %v450_v26, %v627_v24  ;;  %v633_v37 = vrot.slane %v632_v30, 1  ;;  %v644_v38 = vsel %vm643_vm7, %v450_v26, %v627_v24 }
  0xe8   : > { %v366_v28 = vadd.f32 %v365_v22, %v1554_v8  ;;  %v636_v43 = vrot.slane %v635_v32, 2  ;;  %v647_v44 = vsel %vm646_vm8, %v450_v26, %v627_v24  ;;  %v650_v45 = vsel %vm649_vm9, %v627_v24, %v450_v26 }
  0xe9   : > { %v388_v27 = vpop.f32.mrf.mxu1  ;;  %vm440_vm10 = vcmp.ge.f32.partialorder %v435_v29, 0.0  ;;  %v449_v33 = vmul.f32 %v1560_v14, %v435_v29  ;;  %v639_v46 = vrot.slane %v638_v35, 3  ;;  %v642_v47 = vrot.slane %v641_v36, 4 }
  0xea   : > { %v389_v31 = vadd.f32 %v388_v27, %v366_v28  ;;  %v645_v48 = vrot.slane %v644_v38, 5  ;;  %v648_v52 = vrot.slane %v647_v44, 6  ;;  %v651_v53 = vrot.slane %v650_v45, 7 }
  0xeb   : > { %v453_v39 = vsel %vm440_vm10, %v435_v29, %v449_v33  ;;  %v703_v54 = vperm.slane %v1572_v34, 0  ;;  %v704_v58 = vperm.slane %v1572_v34, 1  ;;  %v1584_v59 = vperm.slane %v633_v37, 0 }
  0xec   : > { %v448_v40 = vmul.f32 %v1563_v18, %v389_v31  ;;  %vm439_vm11 = vcmp.ge.f32.partialorder %v389_v31, 0.0  ;;  %v628_v49 = vrot.slane %v453_v39, 7  ;;  %v1586_v60 = vperm.slane %v633_v37, 1 }
  0xed   : > { %v1588_v61 = vperm.slane %v636_v43, 0  ;;  %v1590_v62 = vperm.slane %v636_v43, 1  ;;  %v1592_v63 = vperm.slane %v639_v46, 0  ;;  %v1594_v0 = vperm.slane %v639_v46, 1 }
  0xee   : > { %v452_v55 = vsel %vm439_vm11, %v389_v31, %v448_v40  ;;  %v1596_v1 = vperm.slane %v642_v47, 0  ;;  %v1598_v2 = vperm.slane %v642_v47, 1  ;;  %v1601_v7 = vperm.slane %v645_v48, 0 }
  0xef   : > { %v536_v41 = vpop.f32.mrf.mxu0  ;;  %v653_v3 = vsel %vm631_vm2, %v452_v55, %v628_v49  ;;  %v1603_v9 = vperm.slane %v645_v48, 1  ;;  %v1605_v10 = vperm.slane %v648_v52, 0  ;;  %v1607_v11 = vperm.slane %v648_v52, 1 }
  0xf0   : > { %v582_v42 = vpop.f32.mrf.mxu2  ;;  %v537_v50 = vadd.f32 %v536_v41, %v1554_v8  ;;  %v1609_v12 = vperm.slane %v651_v53, 0  ;;  %v1612_v13 = vsel %vm629_vm4, %v452_v55, %v628_v49  ;;  %v1615_v15 = vsel %vm634_vm3, %v452_v55, %v628_v49 }
  0xf1   : > { %v583_v51 = vadd.f32 %v582_v42, %v1551_v5  ;;  %v1618_v16 = vsel %vm637_vm5, %v452_v55, %v628_v49  ;;  %v654_v17 = vrot.slane %v653_v3, 1  ;;  %v1621_v19 = vsel %vm640_vm6, %v452_v55, %v628_v49 }
  0xf2   : > { %v559_v56 = vpop.f32.mrf.mxu1  ;;  %v605_v57 = vpop.f32.mrf.mxu3  ;;  %v1624_v20 = vsel %vm643_vm7, %v452_v55, %v628_v49  ;;  %v1627_v21 = vsel %vm646_vm8, %v452_v55, %v628_v49  ;;  %v1630_v22 = vsel %vm649_vm9, %v628_v49, %v452_v55  ;;  %v1634_v25 = vperm.slane %v651_v53, 1 }
  0xf3   : > { %v560_v4 = vadd.f32 %v559_v56, %v537_v50  ;;  %v606_v6 = vadd.f32 %v605_v57, %v583_v51  ;;  %v656_v26 = vrot.slane %v1615_v15, 2  ;;  %v658_v27 = vrot.slane %v1618_v16, 3 }
  0xf4   : > { %v660_v30 = vrot.slane %v1621_v19, 4  ;;  %v662_v31 = vrot.slane %v1624_v20, 5  ;;  %v664_v32 = vrot.slane %v1627_v21, 6  ;;  %v1644_v39 = vperm.slane %v654_v17, 0 }
  0xf5   : > { %v615_v23 = vmul.f32 %v560_v4, %v1563_v18  ;;  %vm612_vm12 = vcmp.ge.f32.partialorder %v606_v6, 0.0  ;;  %v616_v24 = vmul.f32 %v606_v6, %v1560_v14  ;;  %vm611_vm13 = vcmp.ge.f32.partialorder %v560_v4, 0.0 }
  0xf6   : > { %v1656_v56 = vperm.slane %v654_v17, 1 }
  0xf7   : > { %v539_v28 = vpop.f32.mrf.mxu0  ;;  %v620_v33 = vsel %vm612_vm12, %v606_v6, %v616_v24  ;;  %v619_v40 = vsel %vm611_vm13, %v560_v4, %v615_v23  ;;  %v1660_v6 = vperm.slane %v656_v26, 0 }
  0xf8   : > { %v585_v29 = vpop.f32.mrf.mxu2  ;;  %v671_v38 = vrot.slane %v620_v33, 7  ;;  %v540_v41 = vadd.f32 %v539_v28, %v1554_v8 }
  0xf9   : > { %v586_v42 = vadd.f32 %v585_v29, %v1551_v5 }
  0xfa   : > { %v673_v43 = vsel %vm629_vm4, %v619_v40, %v671_v38  ;;  %v674_v44 = vsel %vm631_vm2, %v619_v40, %v671_v38  ;;  %v676_v45 = vsel %vm634_vm3, %v619_v40, %v671_v38  ;;  %v678_v46 = vsel %vm637_vm5, %v619_v40, %v671_v38  ;;  %v562_v51 = vpop.f32.mrf.mxu1  ;;  %v608_v52 = vpop.f32.mrf.mxu3 }
  0xfb   : > { %v675_v47 = vrot.slane %v674_v44, 1  ;;  %v677_v48 = vrot.slane %v676_v45, 2  ;;  %v679_v49 = vrot.slane %v678_v46, 3  ;;  %v680_v50 = vsel %vm640_vm6, %v619_v40, %v671_v38 }
  0xfc   : > { %v681_v53 = vrot.slane %v680_v50, 4  ;;  %v682_v8 = vsel %vm643_vm7, %v619_v40, %v671_v38  ;;  %v684_v5 = vsel %vm646_vm8, %v619_v40, %v671_v38  ;;  %v686_v55 = vsel %vm649_vm9, %v671_v38, %v619_v40 }
  0xfd   : > { %v683_v57 = vrot.slane %v682_v8, 5  ;;  %v685_v3 = vrot.slane %v684_v5, 6  ;;  %v687_v4 = vrot.slane %v686_v55, 7  ;;  %v768_v23 = vperm.slane %v673_v43, 1 }
  0xfe   : > { %v1662_v24 = vadd.f32 %v562_v51, %v540_v41  ;;  %v609_v28 = vadd.f32 %v608_v52, %v586_v42  ;;  %v767_v29 = vperm.slane %v673_v43, 0  ;;  %v770_v33 = vperm.slane %v675_v47, 1 }
  0xff   : > { %v772_v44 = vperm.slane %v677_v48, 1  ;;  %v774_v45 = vperm.slane %v679_v49, 1  ;;  %v769_v46 = vperm.slane %v675_v47, 0  ;;  %v771_v38 = vperm.slane %v677_v48, 0 }
 0x100   : > { %v776_v40 = vperm.slane %v681_v53, 1  ;;  %v778_v17 = vperm.slane %v683_v57, 1  ;;  %v773_v50 = vperm.slane %v679_v49, 0  ;;  %v775_v8 = vperm.slane %v681_v53, 0 }
 0x101   : > { %v780_v5 = vperm.slane %v685_v3, 1  ;;  %v782_v55 = vperm.slane %v687_v4, 1  ;;  %v777_v36 = vperm.slane %v683_v57, 0  ;;  %v779_v37 = vperm.slane %v685_v3, 0 }
 0x102   : > { %v781_v35 = vperm.slane %v687_v4, 0  ;;  %v832_v41 = vsel %vm629_vm4, %v704_v58, %v768_v23  ;;  %v831_v42 = vsel %vm629_vm4, %v703_v54, %v767_v29  ;;  %v834_v43 = vsel %vm629_vm4, %v1586_v60, %v770_v33 }
 0x103   : > { %v836_v47 = vsel %vm629_vm4, %v1590_v62, %v772_v44  ;;  %v838_v48 = vsel %vm629_vm4, %v1594_v0, %v774_v45  ;;  %v833_v49 = vsel %vm629_vm4, %v1584_v59, %v769_v46  ;;  %v835_v51 = vsel %vm629_vm4, %v1588_v61, %v771_v38 }
 0x104   : > { %v840_v34 = vsel %vm629_vm4, %v1598_v2, %v776_v40  ;;  %v842_v54 = vsel %vm629_vm4, %v1603_v9, %v778_v17  ;;  %v837_v58 = vsel %vm629_vm4, %v1592_v63, %v773_v50  ;;  %v844_v60 = vsel %vm629_vm4, %v1607_v11, %v780_v5 }
 0x105   : > { %v846_v62 = vsel %vm629_vm4, %v1634_v25, %v782_v55  ;;  %v895_v0 = vrot.slane %v832_v41, 6  ;;  %v896_v59 = vrot.slane %v834_v43, 6  ;;  %v897_v52 = vrot.slane %v836_v47, 6 }
 0x106   : > { %v898_v53 = vrot.slane %v838_v48, 6  ;;  %v899_v61 = vrot.slane %v840_v34, 6  ;;  %v839_v2 = vsel %vm629_vm4, %v1596_v1, %v775_v8  ;;  %v900_v57 = vrot.slane %v842_v54, 6 }
 0x107   : > { %v901_v3 = vrot.slane %v844_v60, 6  ;;  %v912_v9 = vsel %vm911_vm14, %v831_v42, %v895_v0  ;;  %v902_v4 = vrot.slane %v846_v62, 6  ;;  %v913_v63 = vsel %vm911_vm14, %v833_v49, %v896_v59 }
 0x108   : > { %v914_v11 = vsel %vm911_vm14, %v835_v51, %v897_v52  ;;  %v915_v23 = vsel %vm911_vm14, %v837_v58, %v898_v53  ;;  %928 = vst [vmem:[#allocation1] ss:$4 sm:$0xff] %v912_v9  ;;  %v1698_v25 = vperm.slane %v656_v26, 1  ;;  %v841_v29 = vsel %vm629_vm4, %v1601_v7, %v777_v36 }
 0x109   : > { %v916_v1 = vsel %vm911_vm14, %v839_v2, %v899_v61  ;;  %930 = vst [vmem:[#allocation1 + $0x1] ss:$4 sm:$0xff] %v913_v63  ;;  %v617_v33 = vmul.f32 %v1662_v24, %v1563_v18  ;;  %v843_v44 = vsel %vm629_vm4, %v1605_v10, %v779_v37  ;;  %v917_v45 = vsel %vm911_vm14, %v841_v29, %v900_v57 }
 0x10a   : > { %932 = vst [vmem:[#allocation1 + $0x2] ss:$4 sm:$0xff] %v914_v11  ;;  %vm614_vm15 = vcmp.ge.f32.partialorder %v609_v28, 0.0  ;;  %v618_v15 = vmul.f32 %v609_v28, %v1560_v14  ;;  %v1711_v26 = vperm.slane %v658_v27, 0  ;;  %v845_v7 = vsel %vm629_vm4, %v1609_v12, %v781_v35 }
 0x10b   : > { %v918_v36 = vsel %vm911_vm14, %v843_v44, %v901_v3  ;;  %934 = vst [vmem:[#allocation1 + $0x3] ss:$4 sm:$0xff] %v915_v23  ;;  %vm613_vm0 = vcmp.ge.f32.partialorder %v1662_v24, 0.0  ;;  %v726_v18 = vperm.slane %v658_v27, 1  ;;  %v1721_v10 = vperm.slane %v660_v30, 0 }
 0x10c   : > { %v919_v14 = vsel %vm911_vm14, %v845_v7, %v902_v4  ;;  %936 = vst [vmem:[#allocation1 + $0x20] ss:$4 sm:$0xff] %v916_v1  ;;  %v622_v37 = vsel %vm614_vm15, %v609_v28, %v618_v15  ;;  %v728_v46 = vperm.slane %v660_v30, 1  ;;  %v1728_v12 = vperm.slane %v662_v31, 0 }
 0x10d   : > { %v730_v35 = vperm.slane %v662_v31, 1  ;;  %938 = vst [vmem:[#allocation1 + $0x21] ss:$4 sm:$0xff] %v917_v45  ;;  %v672_v16 = vrot.slane %v622_v37, 7  ;;  %v1734_v27 = vperm.slane %v664_v32, 0  ;;  %v732_v38 = vperm.slane %v664_v32, 1 }
 0x10e   : > { %v1851_v28 = vrot.slane %v1630_v22, 7  ;;  %940 = vst [vmem:[#allocation1 + $0x22] ss:$4 sm:$0xff] %v918_v36  ;;  %v621_v30 = vsel %vm613_vm0, %v1662_v24, %v617_v33  ;;  %v1852_v4 = vperm.slane %v1612_v13, 1  ;;  %v1853_v29 = vperm.slane %v1612_v13, 0 }
 0x10f   : > { %942 = vst [vmem:[#allocation1 + $0x23] ss:$4 sm:$0xff] %v919_v14  ;;  %v688_v20 = vsel %vm629_vm4, %v621_v30, %v672_v16  ;;  %v689_v31 = vsel %vm631_vm2, %v621_v30, %v672_v16  ;;  %v691_v40 = vsel %vm634_vm3, %v621_v30, %v672_v16  ;;  %v693_v17 = vsel %vm637_vm5, %v621_v30, %v672_v16 }
 0x110   : > { %v734_v19 = vperm.slane %v1851_v28, 1  ;;  %v690_v50 = vrot.slane %v689_v31, 1  ;;  %v692_v8 = vrot.slane %v691_v40, 2  ;;  %v694_v21 = vrot.slane %v693_v17, 3 }
 0x111   : > { %v695_v32 = vsel %vm640_vm6, %v621_v30, %v672_v16  ;;  %v697_v55 = vsel %vm643_vm7, %v621_v30, %v672_v16  ;;  %v699_v41 = vsel %vm646_vm8, %v621_v30, %v672_v16  ;;  %v701_v24 = vsel %vm649_vm9, %v672_v16, %v621_v30 }
 0x112   : > { %v696_v5 = vrot.slane %v695_v32, 4  ;;  %v698_v42 = vrot.slane %v697_v55, 5  ;;  %v700_v43 = vrot.slane %v699_v41, 6  ;;  %v702_v47 = vrot.slane %v701_v24, 7 }
 0x113   : > { %v783_v48 = vperm.slane %v688_v20, 0  ;;  %v784_v49 = vperm.slane %v688_v20, 1  ;;  %v785_v51 = vperm.slane %v690_v50, 0  ;;  %v786_v34 = vperm.slane %v690_v50, 1 }
 0x114   : > { %v787_v54 = vperm.slane %v692_v8, 0  ;;  %v788_v58 = vperm.slane %v692_v8, 1  ;;  %v789_v60 = vperm.slane %v694_v21, 0  ;;  %v790_v62 = vperm.slane %v694_v21, 1 }
 0x115   : > { %v791_v0 = vperm.slane %v696_v5, 0  ;;  %v792_v59 = vperm.slane %v696_v5, 1  ;;  %v793_v52 = vperm.slane %v698_v42, 0  ;;  %v794_v53 = vperm.slane %v698_v42, 1 }
 0x116   : > { %v795_v61 = vperm.slane %v700_v43, 0  ;;  %v796_v2 = vperm.slane %v700_v43, 1  ;;  %v797_v57 = vperm.slane %v702_v47, 0  ;;  %v798_v3 = vperm.slane %v702_v47, 1 }
 0x117   : > { %v943_v9 = vld.sshfl [vmem:[#allocation1] sm:$0xff pattern:$0x73625140]  ;;  %v848_v63 = vsel %vm629_vm4, %v1852_v4, %v784_v49  ;;  %v944_v11 = vld.sshfl [vmem:[#allocation1 + $0x8] sm:$0xff pattern:$0x73625140]  ;;  %v847_v1 = vsel %vm629_vm4, %v1853_v29, %v783_v48  ;;  %v850_v33 = vsel %vm629_vm4, %v1656_v56, %v786_v34  ;;  %v852_v44 = vsel %vm629_vm4, %v1698_v25, %v788_v58 }
 0x118   : > { %v945_v23 = vld.sshfl [vmem:[#allocation1 + $0x20] sm:$0xff pattern:$0x73625140]  ;;  %967 = vst [vmem:[%s1753_s29] sm:$0xff] %v943_v9  ;;  %v854_v45 = vsel %vm629_vm4, %v726_v18, %v790_v62  ;;  %v946_v15 = vld.sshfl [vmem:[#allocation1 + $0x28] sm:$0xff pattern:$0x73625140]  ;;  %v849_v7 = vsel %vm629_vm4, %v1644_v39, %v785_v51  ;;  %v851_v36 = vsel %vm629_vm4, %v1660_v6, %v787_v54  ;;  %v856_v13 = vsel %vm629_vm4, %v728_v46, %v792_v59 }
 0x119   : > { %968 = vst [vmem:[%s1753_s29 + $0x8] sm:$0xff] %v944_v11  ;;  %v858_v14 = vsel %vm629_vm4, %v730_v35, %v794_v53  ;;  %v853_v56 = vsel %vm629_vm4, %v1711_v26, %v789_v60  ;;  %v860_v25 = vsel %vm629_vm4, %v732_v38, %v796_v2  ;;  %v862_v18 = vsel %vm629_vm4, %v734_v19, %v798_v3 }
 0x11a   : > { %969 = vst [vmem:[%s1753_s29 + $0x10] sm:$0xff] %v945_v23  ;;  %v903_v37 = vrot.slane %v848_v63, 6  ;;  %v904_v16 = vrot.slane %v850_v33, 6  ;;  %v905_v28 = vrot.slane %v852_v44, 6  ;;  %v906_v39 = vrot.slane %v854_v45, 6 }
 0x11b   : > { %970 = vst [vmem:[%s1753_s29 + $0x18] sm:$0xff] %v946_v15  ;;  %v907_v30 = vrot.slane %v856_v13, 6  ;;  %v855_v6 = vsel %vm629_vm4, %v1721_v10, %v791_v0  ;;  %v908_v46 = vrot.slane %v858_v14, 6  ;;  %v909_v20 = vrot.slane %v860_v25, 6 }
 0x11c   : > { %v920_v35 = vsel %vm911_vm14, %v847_v1, %v903_v37  ;;  %v910_v31 = vrot.slane %v862_v18, 6  ;;  %v921_v26 = vsel %vm911_vm14, %v849_v7, %v904_v16  ;;  %v922_v38 = vsel %vm911_vm14, %v851_v36, %v905_v28 }
 0x11d   : > { %v923_v19 = vsel %vm911_vm14, %v853_v56, %v906_v39  ;;  %947 = vst [vmem:[#allocation1] ss:$4 sm:$0xff] %v920_v35  ;;  %v1854_v40 = vrot.slane %v1630_v22, 7  ;;  %v857_v50 = vsel %vm629_vm4, %v1728_v12, %v793_v52  ;;  %v924_v10 = vsel %vm911_vm14, %v855_v6, %v907_v30 }
 0x11e   : > { %948 = vst [vmem:[#allocation1 + $0x1] ss:$4 sm:$0xff] %v921_v26  ;;  %v859_v8 = vsel %vm629_vm4, %v1734_v27, %v795_v61  ;;  %v925_v21 = vsel %vm911_vm14, %v857_v50, %v908_v46 }
 0x11f   : > { %v733_v17 = vperm.slane %v1854_v40, 0  ;;  %949 = vst [vmem:[#allocation1 + $0x2] ss:$4 sm:$0xff] %v922_v38  ;;  %v926_v22 = vsel %vm911_vm14, %v859_v8, %v909_v20 }
 0x120   : > { %950 = vst [vmem:[#allocation1 + $0x3] ss:$4 sm:$0xff] %v923_v19 }
 0x121   : > { %v861_v32 = vsel %vm629_vm4, %v733_v17, %v797_v57  ;;  %951 = vst [vmem:[#allocation1 + $0x20] ss:$4 sm:$0xff] %v924_v10 }
 0x122   : > { %v927_v5 = vsel %vm911_vm14, %v861_v32, %v910_v31  ;;  %952 = vst [vmem:[#allocation1 + $0x21] ss:$4 sm:$0xff] %v925_v21 }
 0x123   : > { %953 = vst [vmem:[#allocation1 + $0x22] ss:$4 sm:$0xff] %v926_v22 }
 0x124   : > { %954 = vst [vmem:[#allocation1 + $0x23] ss:$4 sm:$0xff] %v927_v5 }
 0x127   : > { %v955_v12 = vld.sshfl [vmem:[#allocation1] sm:$0xff pattern:$0x73625140]  ;;  %v956_v27 = vld.sshfl [vmem:[#allocation1 + $0x8] sm:$0xff pattern:$0x73625140] }
 0x128   : > { %971 = vst [vmem:[%s1753_s29 + $0x20] sm:$0xff] %v955_v12 }
 0x129   : > { %972 = vst [vmem:[%s1753_s29 + $0x28] sm:$0xff] %v956_v27 }
 0x12b   : > { %v957_v55 = vld.sshfl [vmem:[#allocation1 + $0x20] sm:$0xff pattern:$0x73625140]  ;;  %v958_v41 = vld.sshfl [vmem:[#allocation1 + $0x28] sm:$0xff pattern:$0x73625140] }
 0x12c   : > { %973 = vst [vmem:[%s1753_s29 + $0x30] sm:$0xff] %v957_v55 }
 0x12d   : > { %974 = vst [vmem:[%s1753_s29 + $0x38] sm:$0xff] %v958_v41 }
 0x12e   : > { %1325 = shalt.err (!%p1322_p0)
}
 0x12f   : > { %s1390_s14 = smov 256   ;;  %s1391_s23 = smov 16  }
 0x130   : > { %1131 = dma.vmem_to_hbm [thread:$0]  (%p1492_p2), %s992_s6, 1024, %s994_s7, %s976_s18, %s1390_s14, %s1390_s14, %s1391_s23  }
 0x131 PF: > { %s1008_s24 = sand.u32 1, %s1364_s15   ;;  %p1145_p4 = pnand %p1105_p10, %p1462_p5 }
 0x132   : > { %s1009_s29 = scalar_lea.sflag [#allocation4], %s1008_s24 }
 0x133   : > { %p1146_p6 = pneg %p1145_p4 }
 0x135   : > { %1359 = dma.done.wait (%p1146_p6), %s1009_s29, 1024  }
 0x136   : > { %1361 = vsyncadd (%p1146_p6), %s1009_s29, 4294966272  ;;  %s21_s20 = sadd.s32 1, %s1384_s20   ;;  %s1855_s15 = smov %s1368_s16 }
 0x137   : > { %p18_p8 = scmp.ge.s32.totalorder %s21_s20, 4   ;;  %s1856_s16 = smov %s1372_s17 }
 0x138   : > { %s1857_s17 = smov %s1502_s30  ;;  %s1858_s18 = smov %s1380_s19 }
 0x139   : > { %s1859_s19 = smov %s1861_s13  ;;  %20 = sbr.rel (!%p18_p8) target bundleno = 9 (0x9), region = 97 }
 0x13e   :  { %1015 = vsyncpa [#allocation3], 1 }
 0x13f   :  { %1017 = vsyncpa [#allocation3 + $0x1], 1 }
 0x140   :  { %1018 = vsyncpa [#allocation6], 1 }
 0x141   :  { %1019 = vsyncpa [#allocation4], 1 }
 0x142   :  { %1021 = vsyncpa [#allocation4 + $0x1], 1 }

</bundles_post_ra>
